<compile_context>
chip_gen: v5e
topology: v5e:2x2
jax: 0.10.0
libtpu: 0.0.40
codegen_flags: <defaults>
</compile_context>

<pallas_src>
import jax
import jax.numpy as jnp
from jax import lax
from jax.experimental import pallas as pl
from jax.experimental.pallas import tpu as pltpu


# ---------------------------------------------------------------------------
# Kernel
# ---------------------------------------------------------------------------
def mlp_critic_kernel(x_ref, w1_ref, b1_ref, w2_ref, b2_ref, w3t_ref, b3_ref, o_ref):
    # Layer 1: (H1, Bt) = tanh(W1^T @ X^T + b1_col).  Batch on lanes; the operand
    # shuffle is expressed purely through dimension_numbers (XLU inside the kernel).
    h1 = jnp.tanh(
        lax.dot_general(
            w1_ref[...],                 # (D, H1)
            x_ref[...],                  # (Bt, D)
            dimension_numbers=(((0,), (1,)), ((), ())),
            preferred_element_type=jnp.float32,
        )                                # -> (H1, Bt)
        + b1_ref[...]                    # (H1, 1) broadcast along lanes
    )
    # Layer 2: (H2, Bt) = tanh(W2^T @ H1 + b2_col).
    h2 = jnp.tanh(
        lax.dot_general(
            w2_ref[...],                 # (H1, H2)
            h1.astype(w2_ref.dtype),     # (H1, Bt)
            dimension_numbers=(((0,), (0,)), ((), ())),
            preferred_element_type=jnp.float32,
        )                                # -> (H2, Bt)
        + b2_ref[...]                    # (H2, 1)
    )
    # Output layer (H2 -> 1): lane-dense (1, Bt) row, unmasked full-width stores.
    v = lax.dot_general(
        w3t_ref[...],                    # (1, H2)
        h2.astype(w3t_ref.dtype),        # (H2, Bt)
        dimension_numbers=(((1,), (0,)), ((), ())),
        preferred_element_type=jnp.float32,
    )                                    # -> (1, Bt)
    o_ref[...] = (v + b3_ref[0]).astype(o_ref.dtype)


# ---------------------------------------------------------------------------
# Helpers
# ---------------------------------------------------------------------------
def _round_up(x, m):
    return ((x + m - 1) // m) * m


def _vmem_capacity_bytes():
    """Per-core VMEM capacity; conservative (v7x) fallback if the query fails."""
    try:
        cap = int(pltpu.get_tpu_info().vmem_capacity_bytes)
        if cap > 0:
            return cap
    except Exception:
        pass
    return 64 << 20  # v7x per-TensorCore VMEM


def _choose_batch_tile(B, D, H1, H2, in_itemsize, vmem_capacity):
    """Pick a batch tile.

    Small B : one full-array tile (block == full array satisfies the (8,128) rule).
    Large B : large 128-multiple tiles to amortize the ~0.35us fixed per-step cost
              (target 8192 rows on 128 MiB parts, 4096 on 64 MiB v7x), capped by a
              VMEM budget and kept at >= 2 grid steps so both v7x TCs get work.
    """
    B = max(B, 1)
    if B <= 1024:
        return _round_up(B, 8)
    target = 8192 if vmem_capacity >= (96 << 20) else 4096
    # Per-row VMEM: double-buffered obs + double-buffered output row + activations.
    per_row = 2 * D * in_itemsize + 2 * 4 + (H1 + H2) * 4
    budget = int(0.5 * vmem_capacity)
    cap = max((budget // max(per_row, 1)) // 128 * 128, 128)
    target = max(min(target, cap), 128)
    bp128 = _round_up(B, 128)
    n_steps = max(2, pl.cdiv(bp128, target))
    return _round_up(pl.cdiv(bp128, n_steps), 128)


def _vmem_limit_bytes(batch_tile, D, H1, H2, in_itemsize, vmem_capacity):
    f32 = 4
    weights = 2 * ((D * H1 + H1 * H2 + H2) * in_itemsize + (H1 + H2 + 1) * f32)
    stream = 2 * batch_tile * D * in_itemsize + 2 * batch_tile * f32
    acts = batch_tile * (D + H1 + H2 + 1) * f32
    est = weights + stream + acts
    lo = 16 << 20
    hi = max(int(0.75 * vmem_capacity), lo)   # generation-aware cap (48 MiB on v7x)
    return int(min(max(4 * est, lo), hi))


def _resident_spec(shape, use_single_buffer):
    """Constant-index (VMEM-resident) parameter block; single-buffered if possible."""
    if use_single_buffer:
        return pl.BlockSpec(shape, lambda i: (0, 0), pipeline_mode=pl.Buffered(1))
    return pl.BlockSpec(shape, lambda i: (0, 0))


# Tri-state cache: None = untested, True/False = whether Buffered(1) lowers cleanly.
_SINGLE_BUFFER_WEIGHTS_OK = hasattr(pl, "Buffered") or None
if _SINGLE_BUFFER_WEIGHTS_OK is None:
    _SINGLE_BUFFER_WEIGHTS_OK = False


# ---------------------------------------------------------------------------
# Wrapper
# ---------------------------------------------------------------------------
def mlp_critic_forward(obs, params, *, batch_tile=None, compute_dtype=None):
    """obs: (B, obs_dim). Returns (B,) f32, matching torch.squeeze(v_net(obs), -1).

    compute_dtype: optional streaming dtype for obs/weights (e.g. jnp.bfloat16 on
    v6e/v7x — halves the only B-scaled HBM traffic).  Accumulation, biases and
    tanh always stay in float32, so the default (None) path matches the f32
    PyTorch module bit-for-bit up to MXU accumulation order.
    """
    global _SINGLE_BUFFER_WEIGHTS_OK

    w1, b1, w2, b2, w3, b3 = params
    B, D = obs.shape
    H1 = w1.shape[1]
    H2 = w2.shape[1]

    if compute_dtype is not None:
        obs = obs.astype(compute_dtype)
        w1 = w1.astype(compute_dtype)
        w2 = w2.astype(compute_dtype)
        w3 = w3.astype(compute_dtype)
        # b1/b2/b3 stay f32: bias-add / tanh run in f32 (v5e has no bf16 VPU/EUP).

    in_itemsize = jnp.dtype(obs.dtype).itemsize
    vmem_cap = _vmem_capacity_bytes()

    if batch_tile is None:
        batch_tile = _choose_batch_tile(B, D, H1, H2, in_itemsize, vmem_cap)
    if batch_tile >= B:
        batch_tile = _round_up(batch_tile, 8)     # single tile: block == full array
    else:
        batch_tile = _round_up(batch_tile, 128)   # lane/sublane-aligned multi-tile

    Bp = _round_up(B, batch_tile)
    if Bp != B:
        obs = jnp.pad(obs, ((0, Bp - B), (0, 0)))
    grid = (Bp // batch_tile,)

    # Bias columns so the broadcast runs along lanes (batch axis).
    b1c = jnp.reshape(b1, (H1, 1)).astype(jnp.float32)
    b2c = jnp.reshape(b2, (H2, 1)).astype(jnp.float32)
    # w3 is stored (H2, 1); present it as a (1, H2) row for the lane-dense contraction.
    w3t = jnp.reshape(w3, (1, H2))
    # b3 is a single scalar -> SMEM.
    b3s = jnp.reshape(b3, (1,)).astype(jnp.float32)

    cost = pl.CostEstimate(
        flops=int(2 * Bp * (D * H1 + H1 * H2 + H2)),
        transcendentals=int(Bp * (H1 + H2)),
        bytes_accessed=int(
            Bp * D * in_itemsize
            + (D * H1 + H1 * H2 + H2) * in_itemsize
            + (H1 + H2 + 1) * 4
            + Bp * 4
        ),
    )
    cparams = pltpu.CompilerParams(
        dimension_semantics=("parallel",),
        vmem_limit_bytes=_vmem_limit_bytes(batch_tile, D, H1, H2, in_itemsize, vmem_cap),
    )

    def _call(single_buffer_weights):
        return pl.pallas_call(
            mlp_critic_kernel,
            out_shape=jax.ShapeDtypeStruct((1, Bp), jnp.float32),
            grid=grid,
            in_specs=[
                pl.BlockSpec((batch_tile, D), lambda i: (i, 0)),   # obs tile (streamed)
                _resident_spec((D, H1), single_buffer_weights),    # W1
                _resident_spec((H1, 1), single_buffer_weights),    # b1 column
                _resident_spec((H1, H2), single_buffer_weights),   # W2
                _resident_spec((H2, 1), single_buffer_weights),    # b2 column
                _resident_spec((1, H2), single_buffer_weights),    # W3 row
                pl.BlockSpec(memory_space=pltpu.MemorySpace.SMEM),  # b3 scalar
            ],
            out_specs=pl.BlockSpec((1, batch_tile), lambda i: (0, i)),  # lane-dense out
            compiler_params=cparams,
            cost_estimate=cost,
        )(obs, w1, b1c, w2, b2c, w3t, b3s)

    if _SINGLE_BUFFER_WEIGHTS_OK:
        try:
            out = _call(True)
        except Exception:
            # Portability fallback: plain double-buffered resident blocks.
            _SINGLE_BUFFER_WEIGHTS_OK = False
            out = _call(False)
    else:
        out = _call(False)

    # Glue: (1, Bp) -> (B,), identical to torch.squeeze(..., -1) minus padding.
    return jnp.reshape(out, (-1,))[:B]


# ---------------------------------------------------------------------------
# Parameters / reference
# ---------------------------------------------------------------------------
def init_params(key, obs_dim, hidden_sizes):
    """PyTorch-default-style init: U(-1/sqrt(fan_in), 1/sqrt(fan_in)) for W and b.

    Weights are stored as (in_features, out_features) == torch Linear.weight.T,
    so y = x @ W + b matches torch's x @ weight.T + bias.
    """
    sizes = [obs_dim] + list(hidden_sizes) + [1]
    params = []
    for j in range(len(sizes) - 1):
        key, kw, kb = jax.random.split(key, 3)
        bound = float(1.0 / (sizes[j] ** 0.5))
        w = jax.random.uniform(kw, (sizes[j], sizes[j + 1]), jnp.float32, -bound, bound)
        b = jax.random.uniform(kb, (1, sizes[j + 1]), jnp.float32, -bound, bound)
        params += [w, b]
    return tuple(params)


def reference_forward(obs, params):
    w1, b1, w2, b2, w3, b3 = params
    h = jnp.tanh(obs @ w1 + b1)
    h = jnp.tanh(h @ w2 + b2)
    v = h @ w3 + b3
    return jnp.squeeze(v, -1)


# ---------------------------------------------------------------------------
# Demo / correctness check
# ---------------------------------------------------------------------------
if __name__ == "__main__":
    key = jax.random.PRNGKey(0)
    k_obs, k_obs2, k_par = jax.random.split(key, 3)

    obs_dim, hidden_sizes = 32, (32, 32)
    params = init_params(k_par, obs_dim, hidden_sizes)

    # Small batch: single-tile path (block == full array).
    obs_small = jax.random.normal(k_obs, (8, obs_dim), jnp.float32)
    v_small = jax.block_until_ready(mlp_critic_forward(obs_small, params))
    ref_small = reference_forward(obs_small, params)
    assert v_small.shape == (8,)
    assert jnp.allclose(v_small, ref_small, atol=1e-4, rtol=1e-4)

    # Non-tile-multiple batch with an explicit small tile: exercises the multi-step
    # "parallel" grid, zero padding and the lane-dense (1, batch_tile) output path.
    obs_big = jax.random.normal(k_obs2, (300, obs_dim), jnp.float32)
    ref_big = reference_forward(obs_big, params)
    v_big = jax.block_until_ready(mlp_critic_forward(obs_big, params, batch_tile=128))
    assert v_big.shape == (300,)
    assert jnp.allclose(v_big, ref_big, atol=1e-4, rtol=1e-4)

    # Auto tile selection (single full tile at this size).
    v_auto = jax.block_until_ready(mlp_critic_forward(obs_big, params))
    assert jnp.allclose(v_auto, ref_big, atol=1e-4, rtol=1e-4)

    # bf16 streaming variant (recommended on v6e/v7x); accumulation/bias/tanh stay f32.
    v_bf16 = jax.block_until_ready(
        mlp_critic_forward(obs_big, params, compute_dtype=jnp.bfloat16)
    )
    assert v_bf16.shape == (300,)
    assert jnp.allclose(v_bf16, ref_big, atol=5e-2, rtol=5e-2)

    print("KERNEL_OK")
</pallas_src>

<mosaic_0001>
module attributes {stable_mosaic.version = 11 : i64} {
  func.func @mlp_critic_kernel(%arg0: i32, %arg1: memref<8x32xf32, #tpu.memory_space<vmem>>, %arg2: memref<32x32xf32, #tpu.memory_space<vmem>>, %arg3: memref<32x1xf32, #tpu.memory_space<vmem>>, %arg4: memref<32x32xf32, #tpu.memory_space<vmem>>, %arg5: memref<32x1xf32, #tpu.memory_space<vmem>>, %arg6: memref<1x32xf32, #tpu.memory_space<vmem>>, %arg7: memref<1xf32, #tpu.memory_space<smem>>, %arg8: memref<1x8xf32, #tpu.memory_space<vmem>>) attributes {dimension_semantics = [#tpu.dimension_semantics<parallel>], iteration_bounds = array<i64: 1>, scalar_prefetch = 0 : i64, scratch_operands = 0 : i64, tpu.core_type = #tpu.core_type<tc>, window_params = [{transform_indices = @transform_0, window_bounds = array<i64: 8, 32>}, {pipeline_mode = #tpu.pipeline_mode<synchronous>, transform_indices = @transform_1, window_bounds = array<i64: 32, 32>}, {pipeline_mode = #tpu.pipeline_mode<synchronous>, transform_indices = @transform_2, window_bounds = array<i64: 32, 1>}, {pipeline_mode = #tpu.pipeline_mode<synchronous>, transform_indices = @transform_3, window_bounds = array<i64: 32, 32>}, {pipeline_mode = #tpu.pipeline_mode<synchronous>, transform_indices = @transform_4, window_bounds = array<i64: 32, 1>}, {pipeline_mode = #tpu.pipeline_mode<synchronous>, transform_indices = @transform_5, window_bounds = array<i64: 1, 32>}, {transform_indices = @transform_6, window_bounds = array<i64: 1>}, {transform_indices = @transform_7, window_bounds = array<i64: 1, 8>}]} {
    %c0 = arith.constant 0 : index
    %c0_0 = arith.constant 0 : index
    %0 = vector.load %arg2[%c0, %c0_0] : memref<32x32xf32, #tpu.memory_space<vmem>>, vector<32x32xf32>
    %c0_1 = arith.constant 0 : index
    %c0_2 = arith.constant 0 : index
    %1 = vector.load %arg1[%c0_1, %c0_2] : memref<8x32xf32, #tpu.memory_space<vmem>>, vector<8x32xf32>
    %cst = arith.constant dense<0.000000e+00> : vector<32x8xf32>
    %2 = tpu.matmul %0, %1, %cst {dimension_numbers = #tpu.dot_dimension_numbers<[0], [1], [1], [0], [0, 1, 1, 0], [], []>} : vector<32x32xf32>, vector<8x32xf32>, vector<32x8xf32> -> vector<32x8xf32>
    %c0_3 = arith.constant 0 : index
    %c0_4 = arith.constant 0 : index
    %3 = vector.load %arg3[%c0_3, %c0_4] : memref<32x1xf32, #tpu.memory_space<vmem>>, vector<32x1xf32>
    %4 = vector.broadcast %3 : vector<32x1xf32> to vector<32x8xf32>
    %5 = arith.addf %2, %4 : vector<32x8xf32>
    %6 = math.tanh %5 : vector<32x8xf32>
    %c0_5 = arith.constant 0 : index
    %c0_6 = arith.constant 0 : index
    %7 = vector.load %arg4[%c0_5, %c0_6] : memref<32x32xf32, #tpu.memory_space<vmem>>, vector<32x32xf32>
    %cst_7 = arith.constant dense<0.000000e+00> : vector<32x8xf32>
    %8 = tpu.matmul %7, %6, %cst_7 {dimension_numbers = #tpu.dot_dimension_numbers<[0], [0], [1], [1], [0, 1, 1, 1], [], []>} : vector<32x32xf32>, vector<32x8xf32>, vector<32x8xf32> -> vector<32x8xf32>
    %c0_8 = arith.constant 0 : index
    %c0_9 = arith.constant 0 : index
    %9 = vector.load %arg5[%c0_8, %c0_9] : memref<32x1xf32, #tpu.memory_space<vmem>>, vector<32x1xf32>
    %10 = vector.broadcast %9 : vector<32x1xf32> to vector<32x8xf32>
    %11 = arith.addf %8, %10 : vector<32x8xf32>
    %12 = math.tanh %11 : vector<32x8xf32>
    %c0_10 = arith.constant 0 : index
    %c0_11 = arith.constant 0 : index
    %13 = vector.load %arg6[%c0_10, %c0_11] : memref<1x32xf32, #tpu.memory_space<vmem>>, vector<1x32xf32>
    %cst_12 = arith.constant dense<0.000000e+00> : vector<1x8xf32>
    %14 = tpu.matmul %13, %12, %cst_12 {dimension_numbers = #tpu.dot_dimension_numbers<[1], [0], [0], [1], [0, 0, 1, 1], [], []>} : vector<1x32xf32>, vector<32x8xf32>, vector<1x8xf32> -> vector<1x8xf32>
    %c0_13 = arith.constant 0 : index
    %15 = memref.load %arg7[%c0_13] : memref<1xf32, #tpu.memory_space<smem>>
    %16 = vector.broadcast %15 : f32 to vector<1x8xf32>
    %17 = arith.addf %14, %16 : vector<1x8xf32>
    %c0_14 = arith.constant 0 : index
    %c0_15 = arith.constant 0 : index
    %18 = vector.load %arg8[%c0_14, %c0_15] : memref<1x8xf32, #tpu.memory_space<vmem>>, vector<1x8xf32>
    tpu.vector_store %arg8[%c0_14, %c0_15], %17 {strides = array<i32>} : memref<1x8xf32, #tpu.memory_space<vmem>>, vector<1x8xf32>,
    return
  }
  func.func @transform_0(%arg0: i32) -> (i32, i32) {
    %c0_i32 = arith.constant 0 : i32
    %c0_i32_0 = arith.constant 0 : i32
    return %arg0, %c0_i32 : i32, i32
  }
  func.func @transform_1(%arg0: i32) -> (i32, i32) {
    %c0_i32 = arith.constant 0 : i32
    %c0_i32_0 = arith.constant 0 : i32
    %c0_i32_1 = arith.constant 0 : i32
    return %c0_i32, %c0_i32_0 : i32, i32
  }
  func.func @transform_2(%arg0: i32) -> (i32, i32) {
    %c0_i32 = arith.constant 0 : i32
    %c0_i32_0 = arith.constant 0 : i32
    %c0_i32_1 = arith.constant 0 : i32
    return %c0_i32, %c0_i32_0 : i32, i32
  }
  func.func @transform_3(%arg0: i32) -> (i32, i32) {
    %c0_i32 = arith.constant 0 : i32
    %c0_i32_0 = arith.constant 0 : i32
    %c0_i32_1 = arith.constant 0 : i32
    return %c0_i32, %c0_i32_0 : i32, i32
  }
  func.func @transform_4(%arg0: i32) -> (i32, i32) {
    %c0_i32 = arith.constant 0 : i32
    %c0_i32_0 = arith.constant 0 : i32
    %c0_i32_1 = arith.constant 0 : i32
    return %c0_i32, %c0_i32_0 : i32, i32
  }
  func.func @transform_5(%arg0: i32) -> (i32, i32) {
    %c0_i32 = arith.constant 0 : i32
    %c0_i32_0 = arith.constant 0 : i32
    %c0_i32_1 = arith.constant 0 : i32
    return %c0_i32, %c0_i32_0 : i32, i32
  }
  func.func @transform_6(%arg0: i32) -> i32 {
    %c0_i32 = arith.constant 0 : i32
    %c0_i32_0 = arith.constant 0 : i32
    return %c0_i32 : i32
  }
  func.func @transform_7(%arg0: i32) -> (i32, i32) {
    %c0_i32 = arith.constant 0 : i32
    %c0_i32_0 = arith.constant 0 : i32
    return %c0_i32, %arg0 : i32, i32
  }
}

module attributes {stable_mosaic.version = 11 : i64} {
  func.func @mlp_critic_kernel(%arg0: i32, %arg1: memref<8x32xf32, #tpu.memory_space<vmem>>, %arg2: memref<32x32xf32, #tpu.memory_space<vmem>>, %arg3: memref<32x1xf32, #tpu.memory_space<vmem>>, %arg4: memref<32x32xf32, #tpu.memory_space<vmem>>, %arg5: memref<32x1xf32, #tpu.memory_space<vmem>>, %arg6: memref<1x32xf32, #tpu.memory_space<vmem>>, %arg7: memref<1xf32, #tpu.memory_space<smem>>, %arg8: memref<1x8xf32, #tpu.memory_space<vmem>>) attributes {dimension_semantics = [#tpu.dimension_semantics<parallel>], iteration_bounds = array<i64: 1>, scalar_prefetch = 0 : i64, scratch_operands = 0 : i64, tpu.core_type = #tpu.core_type<tc>, window_params = [{transform_indices = @transform_0, window_bounds = array<i64: 8, 32>}, {pipeline_mode = #tpu.pipeline_mode<synchronous>, transform_indices = @transform_1, window_bounds = array<i64: 32, 32>}, {pipeline_mode = #tpu.pipeline_mode<synchronous>, transform_indices = @transform_2, window_bounds = array<i64: 32, 1>}, {pipeline_mode = #tpu.pipeline_mode<synchronous>, transform_indices = @transform_3, window_bounds = array<i64: 32, 32>}, {pipeline_mode = #tpu.pipeline_mode<synchronous>, transform_indices = @transform_4, window_bounds = array<i64: 32, 1>}, {pipeline_mode = #tpu.pipeline_mode<synchronous>, transform_indices = @transform_5, window_bounds = array<i64: 1, 32>}, {transform_indices = @transform_6, window_bounds = array<i64: 1>}, {transform_indices = @transform_7, window_bounds = array<i64: 1, 8>}]} {
    %c0 = arith.constant 0 : index
    %c0_0 = arith.constant 0 : index
    %0 = vector.load %arg2[%c0, %c0_0] : memref<32x32xf32, #tpu.memory_space<vmem>>, vector<32x32xf32>
    %c0_1 = arith.constant 0 : index
    %c0_2 = arith.constant 0 : index
    %1 = vector.load %arg1[%c0_1, %c0_2] : memref<8x32xf32, #tpu.memory_space<vmem>>, vector<8x32xf32>
    %cst = arith.constant dense<0.000000e+00> : vector<32x8xf32>
    %2 = tpu.matmul %0, %1, %cst {dimension_numbers = #tpu.dot_dimension_numbers<[0], [1], [1], [0], [0, 1, 1, 0], [], []>} : vector<32x32xf32>, vector<8x32xf32>, vector<32x8xf32> -> vector<32x8xf32>
    %c0_3 = arith.constant 0 : index
    %c0_4 = arith.constant 0 : index
    %3 = vector.load %arg3[%c0_3, %c0_4] : memref<32x1xf32, #tpu.memory_space<vmem>>, vector<32x1xf32>
    %4 = vector.broadcast %3 : vector<32x1xf32> to vector<32x8xf32>
    %5 = arith.addf %2, %4 : vector<32x8xf32>
    %6 = math.tanh %5 : vector<32x8xf32>
    %c0_5 = arith.constant 0 : index
    %c0_6 = arith.constant 0 : index
    %7 = vector.load %arg4[%c0_5, %c0_6] : memref<32x32xf32, #tpu.memory_space<vmem>>, vector<32x32xf32>
    %cst_7 = arith.constant dense<0.000000e+00> : vector<32x8xf32>
    %8 = tpu.matmul %7, %6, %cst_7 {dimension_numbers = #tpu.dot_dimension_numbers<[0], [0], [1], [1], [0, 1, 1, 1], [], []>} : vector<32x32xf32>, vector<32x8xf32>, vector<32x8xf32> -> vector<32x8xf32>
    %c0_8 = arith.constant 0 : index
    %c0_9 = arith.constant 0 : index
    %9 = vector.load %arg5[%c0_8, %c0_9] : memref<32x1xf32, #tpu.memory_space<vmem>>, vector<32x1xf32>
    %10 = vector.broadcast %9 : vector<32x1xf32> to vector<32x8xf32>
    %11 = arith.addf %8, %10 : vector<32x8xf32>
    %12 = math.tanh %11 : vector<32x8xf32>
    %c0_10 = arith.constant 0 : index
    %c0_11 = arith.constant 0 : index
    %13 = vector.load %arg6[%c0_10, %c0_11] : memref<1x32xf32, #tpu.memory_space<vmem>>, vector<1x32xf32>
    %cst_12 = arith.constant dense<0.000000e+00> : vector<1x8xf32>
    %14 = tpu.matmul %13, %12, %cst_12 {dimension_numbers = #tpu.dot_dimension_numbers<[1], [0], [0], [1], [0, 0, 1, 1], [], []>} : vector<1x32xf32>, vector<32x8xf32>, vector<1x8xf32> -> vector<1x8xf32>
    %c0_13 = arith.constant 0 : index
    %15 = memref.load %arg7[%c0_13] : memref<1xf32, #tpu.memory_space<smem>>
    %16 = vector.broadcast %15 : f32 to vector<1x8xf32>
    %17 = arith.addf %14, %16 : vector<1x8xf32>
    %c0_14 = arith.constant 0 : index
    %c0_15 = arith.constant 0 : index
    %18 = vector.load %arg8[%c0_14, %c0_15] : memref<1x8xf32, #tpu.memory_space<vmem>>, vector<1x8xf32>
    tpu.vector_store %arg8[%c0_14, %c0_15], %17 {strides = array<i32>} : memref<1x8xf32, #tpu.memory_space<vmem>>, vector<1x8xf32>,
    return
  }
  func.func @transform_0(%arg0: i32) -> (i32, i32) {
    %c0_i32 = arith.constant 0 : i32
    %c0_i32_0 = arith.constant 0 : i32
    return %arg0, %c0_i32 : i32, i32
  }
  func.func @transform_1(%arg0: i32) -> (i32, i32) {
    %c0_i32 = arith.constant 0 : i32
    %c0_i32_0 = arith.constant 0 : i32
    %c0_i32_1 = arith.constant 0 : i32
    return %c0_i32, %c0_i32_0 : i32, i32
  }
  func.func @transform_2(%arg0: i32) -> (i32, i32) {
    %c0_i32 = arith.constant 0 : i32
    %c0_i32_0 = arith.constant 0 : i32
    %c0_i32_1 = arith.constant 0 : i32
    return %c0_i32, %c0_i32_0 : i32, i32
  }
  func.func @transform_3(%arg0: i32) -> (i32, i32) {
    %c0_i32 = arith.constant 0 : i32
    %c0_i32_0 = arith.constant 0 : i32
    %c0_i32_1 = arith.constant 0 : i32
    return %c0_i32, %c0_i32_0 : i32, i32
  }
  func.func @transform_4(%arg0: i32) -> (i32, i32) {
    %c0_i32 = arith.constant 0 : i32
    %c0_i32_0 = arith.constant 0 : i32
    %c0_i32_1 = arith.constant 0 : i32
    return %c0_i32, %c0_i32_0 : i32, i32
  }
  func.func @transform_5(%arg0: i32) -> (i32, i32) {
    %c0_i32 = arith.constant 0 : i32
    %c0_i32_0 = arith.constant 0 : i32
    %c0_i32_1 = arith.constant 0 : i32
    return %c0_i32, %c0_i32_0 : i32, i32
  }
  func.func @transform_6(%arg0: i32) -> i32 {
    %c0_i32 = arith.constant 0 : i32
    %c0_i32_0 = arith.constant 0 : i32
    return %c0_i32 : i32
  }
  func.func @transform_7(%arg0: i32) -> (i32, i32) {
    %c0_i32 = arith.constant 0 : i32
    %c0_i32_0 = arith.constant 0 : i32
    return %c0_i32, %arg0 : i32, i32
  }
}

</mosaic_0001>

<bundles_post_ra>
// kernel: tpu_custom_call.1
= control target key start
LH: loop header
LB: loop body
LE: loop exit
PB: predicated region body
PF: predicated region fallthrough
CT: control target
= control target key end

     0   :  { %13 = vsyncpa [#allocation4], 0  ;;  %s510_s0 = inlined_call_operand.hbm [shape: f32[8,32], index: 0, kind: input, shape index: {}]   ;;  %s511_s1 = inlined_call_operand.vmem [shape: f32[32,32], index: 1, kind: input, shape index: {}]   ;;  %s512_s2 = inlined_call_operand.vmem [shape: f32[32,1], index: 2, kind: input, shape index: {}]   ;;  %s513_s3 = inlined_call_operand.vmem [shape: f32[32,32], index: 3, kind: input, shape index: {}]   ;;  %s514_s4 = inlined_call_operand.vmem [shape: f32[32,1], index: 4, kind: input, shape index: {}]   ;;  %s515_s5 = inlined_call_operand.vmem [shape: f32[1,32], index: 5, kind: input, shape index: {}]   ;;  %s516_s6 = inlined_call_operand.<no memory space> [shape: f32[1], index: 6, kind: input, shape index: {}]   ;;  %s517_s7 = inlined_call_operand.hbm [shape: f32[1,8], index: 7, kind: output, shape index: {}]  }
   0x1   :  { %14 = vsyncpa [#allocation5], 0  ;;  %s20_s26 = sshll.u32 %s510_s0, 4  ;;  %s396_s27 = smov [#allocation3]   ;;  %s21_s26 = int_to_ptr.hbm [resolvable:$true] %s20_s26 }
   0x2   :  { %s22_s28 = sshll.u32 %s396_s27, 4  ;;  %s23_s28 = int_to_ptr.vmem [resolvable:$true] %s22_s28 }
   0x3   :  { %25 = dma.hbm_to_vmem [thread:$0]  %s21_s26, 128, %s23_s28, [#allocation4]  }
   0x4   :  { %392 = dma.done.wait [#allocation4], 128  }
   0x5   :  { %393 = vsyncadd [#allocation4], 4294967168  ;;  %v397_v0 = vmov 0   ;;  %v42_v1 = vld [vmem:[%s511_s1] sm:$0xff]  ;;  %v50_v2 = vld [vmem:[%s512_s2 + $0x18] sm:$0xff]  ;;  %vm103_vm0 = vcmask 261120   ;;  %v259_v59 = vstv %s516_s6 }
   0x6   :  { %325 = vset.pattern.permute.xlu1 %v397_v0  ;;  %326 = vset.pattern.permute.xlu2 %v397_v0  ;;  %v43_v3 = vld [vmem:[%s511_s1 + $0x8] sm:$0xff]  ;;  %v49_v4 = vld [vmem:[%s512_s2 + $0x10] sm:$0xff]  ;;  %v45_v6 = vld [vmem:[%s511_s1 + $0x18] sm:$0xff]  ;;  %s398_s13 = smov [#allocation6]   ;;  %s292_s17 = sshll.u32 %s517_s7, 4  ;;  %vm283_vm1 = vcmask 57344   ;;  %s293_s17 = int_to_ptr.hbm [resolvable:$true] %s292_s17 }
   0x7   :  { %71 = vxpose.xlu0.b32.start [1/4] (short) (narrow) %v42_v1, 32  ;;  %68 = vperm.xlu1 %325, %v50_v2   ;;  %v44_v5 = vld [vmem:[%s511_s1 + $0x10] sm:$0xff]  ;;  %v46_v7 = vld [vmem:[#allocation3] sm:$0xff]  ;;  %v153_v9 = vld [vmem:[%s513_s3 + $0x8] sm:$0xff]  ;;  %s290_s14 = sshll.u32 %s398_s13, 4  ;;  %s291_s14 = int_to_ptr.vmem [resolvable:$true] %s290_s14 }
   0x8   :  { %302 = vmatpush.xpose.msk.msra.mxu0 %vm103_vm0, %v46_v7  ;;  %312 = vmatpush.xpose.msk.msra.mxu1 %vm103_vm0, %v46_v7  ;;  %v152_v8 = vld [vmem:[%s513_s3] sm:$0xff]  ;;  %v154_v10 = vld [vmem:[%s513_s3 + $0x10] sm:$0xff]  ;;  %v155_v11 = vld [vmem:[%s513_s3 + $0x18] sm:$0xff] }
   0x9   :  { %v48_v12 = vld [vmem:[%s512_s2 + $0x8] sm:$0xff]  ;;  %v47_v13 = vld [vmem:[%s512_s2] sm:$0xff]  ;;  %v159_v15 = vld [vmem:[%s514_s4 + $0x18] sm:$0xff] }
   0xa   :  { %58 = vperm.xlu2 %326, %v48_v12   ;;  %v158_v17 = vld [vmem:[%s514_s4 + $0x10] sm:$0xff]  ;;  %v156_v19 = vld [vmem:[%s514_s4] sm:$0xff]  ;;  %v157_v27 = vld [vmem:[%s514_s4 + $0x8] sm:$0xff] }
   0xb   :  { %v257_v57 = vld [vmem:[%s515_s5] sm:$0x1] }
   0xf   :  { %72 = vxpose.xlu0.b32.cont [2/4] (short) (narrow) %v43_v3, 32  ;;  %63 = vperm.xlu1 %325, %v49_v4  }
  0x12   :  { %53 = vperm.xlu2 %326, %v47_v13  }
  0x17   :  { %73 = vxpose.xlu0.b32.cont [3/4] (short) (narrow) %v44_v5, 32 }
  0x1a   :  { %177 = vperm.xlu2 %326, %v159_v15  }
  0x1f   :  { %74 = vxpose.xlu0.b32.end [4/4] (short) (narrow) %v45_v6, 32 }
  0x22   :  { %172 = vperm.xlu2 %326, %v158_v17  }
  0x2a   :  { %162 = vperm.xlu2 %326, %v156_v19  }
  0x44   :  { %180 = vxpose.xlu1.b32.start [1/4] (short) (narrow) %v152_v8, 32 }
  0x4c   :  { %181 = vxpose.xlu1.b32.cont [2/4] (short) (narrow) %v153_v9, 32 }
  0x54   :  { %182 = vxpose.xlu1.b32.cont [3/4] (short) (narrow) %v154_v10, 32 }
  0x5c   :  { %183 = vxpose.xlu1.b32.end [4/4] (short) (narrow) %v155_v11, 32 }
  0x64   :  { %v59_v26 = vpop.permute.xlu2 %58 }
  0x6c   :  { %v54_v34 = vpop.permute.xlu2 %53 }
  0x74   :  { %v178_v42 = vpop.permute.xlu2 %177 }
  0x79   :  { %v69_v21 = vpop.permute.xlu1 %68 }
  0x7c   :  { %v173_v44 = vpop.permute.xlu2 %172 }
  0x81   :  { %v64_v23 = vpop.permute.xlu1 %63 }
  0x84   :  { %v163_v52 = vpop.permute.xlu2 %162 }
  0x86   :  { %327 = vset.pattern.permute.xlu0 %v397_v0 }
  0x8d   :  { %167 = vperm.xlu0 %327, %v157_v27  }
  0xab   :  { %v87_v14 = vpop.trf.xlu0 }
  0xac   :  { %303 = vmatmul.msk.f32.vlgmr.msra.gmra.mxu0 %vm103_vm0, %v87_v14 }
  0xb3   :  { %v88_v16 = vpop.trf.xlu0 }
  0xb4   :  { %304 = vmatmul.msk.f32.gmra.mxu0 %vm103_vm0, %v88_v16 }
  0xbb   :  { %v89_v18 = vpop.trf.xlu0 }
  0xbc   :  { %305 = vmatmul.msk.f32.gmra.mxu0 %vm103_vm0, %v89_v18 }
  0xc3   :  { %v90_v20 = vpop.trf.xlu0 }
  0xc4   :  { %306 = vmatmul.msk.f32.vlgmr.msra.gmra.mxu1 %vm103_vm0, %v90_v20 }
  0xe8   :  { %v196_v25 = vpop.trf.xlu1 }
  0xf0   :  { %v197_v33 = vpop.trf.xlu1 }
  0xf8   :  { %v198_v39 = vpop.trf.xlu1 }
  0xff   :  { %v168_v45 = vpop.permute.xlu0 %167 }
 0x100   :  { %v199_v41 = vpop.trf.xlu1 }
 0x129   :  { %v136_v22 = vpop.f32.mrf.mxu0 }
 0x12a   :  { %v137_v35 = vadd.f32 %v136_v22, %v54_v34 }
 0x131   :  { %v139_v24 = vpop.f32.mrf.mxu0 }
 0x132   :  { %v140_v32 = vadd.f32 %v139_v24, %v59_v26 }
 0x139   :  { %v142_v28 = vpop.f32.mrf.mxu0 }
 0x13a   :  { %v143_v30 = vadd.f32 %v142_v28, %v64_v23 }
 0x141   :  { %v145_v29 = vpop.f32.mrf.mxu1 }
 0x142   :  { %v146_v31 = vadd.f32 %v145_v29, %v69_v21 }
 0x144   :  { %328 = vtanh.f32 %v146_v31 }
 0x145   :  { %330 = vtanh.f32 %v143_v30 }
 0x146   :  { %332 = vtanh.f32 %v140_v32 }
 0x147   :  { %334 = vtanh.f32 %v137_v35 }
 0x14a   :  { %v329_v36 = vpop.eup %328 }
 0x14b   :  { %236 = vmatpush.msrb.mxu1 %v329_v36  ;;  %313 = vmatpush.msra.mxu2 %v329_v36  ;;  %v331_v37 = vpop.eup %330 }
 0x14c   :  { %314 = vmatpush.msra.mxu3 %v329_v36  ;;  %v333_v38 = vpop.eup %332 }
 0x14d   :  { %237 = vmatpush.msrb.mxu1 %v331_v37  ;;  %315 = vmatpush.msra.mxu2 %v331_v37  ;;  %v335_v40 = vpop.eup %334 }
 0x14e   :  { %316 = vmatpush.msra.mxu3 %v331_v37 }
 0x14f   :  { %238 = vmatpush.msrb.mxu1 %v333_v38  ;;  %317 = vmatpush.msra.mxu2 %v333_v38 }
 0x150   :  { %318 = vmatpush.msra.mxu3 %v333_v38 }
 0x151   :  { %239 = vmatpush.msrb.mxu1 %v335_v40  ;;  %319 = vmatpush.msra.mxu2 %v335_v40 }
 0x152   :  { %320 = vmatpush.msra.mxu3 %v335_v40  ;;  %307 = vmatmul.msk.f32.vlgmr.msrb.gmra.mxu1 %vm103_vm0, %v196_v25 }
 0x153   :  { %308 = vmatmul.msk.f32.vlgmr.msra.gmra.mxu2 %vm103_vm0, %v197_v33  ;;  %309 = vmatmul.msk.f32.vlgmr.msra.gmra.mxu3 %vm103_vm0, %v198_v39 }
 0x15b   :  { %310 = vmatmul.msk.f32.gmra.mxu3 %vm103_vm0, %v199_v41 }
 0x1cf   :  { %v241_v50 = vpop.f32.mrf.mxu1 }
 0x1d0   :  { %v242_v53 = vadd.f32 %v241_v50, %v163_v52 }
 0x1d6   :  { %v247_v43 = vpop.f32.mrf.mxu3  ;;  %v244_v46 = vpop.f32.mrf.mxu2 }
 0x1d7   :  { %v248_v48 = vadd.f32 %v247_v43, %v173_v44  ;;  %v245_v51 = vadd.f32 %v244_v46, %v168_v45 }
 0x1de   :  { %v250_v47 = vpop.f32.mrf.mxu3 }
 0x1df   :  { %v251_v49 = vadd.f32 %v250_v47, %v178_v42 }
 0x1e1   :  { %336 = vtanh.f32 %v251_v49 }
 0x1e2   :  { %338 = vtanh.f32 %v248_v48 }
 0x1e3   :  { %340 = vtanh.f32 %v245_v51 }
 0x1e4   :  { %342 = vtanh.f32 %v242_v53 }
 0x1e7   :  { %v337_v54 = vpop.eup %336 }
 0x1e8   :  { %275 = vmatpush.msrb.mxu2 %v337_v54  ;;  %v339_v55 = vpop.eup %338 }
 0x1e9   :  { %v341_v56 = vpop.eup %340 }
 0x1ea   :  { %276 = vmatpush.msrb.mxu2 %v339_v55  ;;  %v343_v58 = vpop.eup %342 }
 0x1ec   :  { %277 = vmatpush.msrb.mxu2 %v341_v56 }
 0x1ee   :  { %278 = vmatpush.msrb.mxu2 %v343_v58 }
 0x1ef   :  { %311 = vmatmul.msk.f32.vlgmr.msrb.gmra.mxu2 %vm103_vm0, %v257_v57 }
 0x272   :  { %v280_v60 = vpop.f32.mrf.mxu2 }
 0x273   :  { %v281_v61 = vadd.f32 %v280_v60, %v259_v59 }
 0x275   :  { %284 = vst.msk [vmem:[#allocation6] sm:$0x1] %vm283_vm1, %v281_v61 }
 0x276   :  { %295 = dma.vmem_to_hbm [thread:$0]  %s291_s14, 16, %s293_s17, [#allocation5]  }
 0x277   :  { %394 = dma.done.wait [#allocation5], 16  }
 0x278   :  { %395 = vsyncadd [#allocation5], 4294967280 }
 0x279   :  { %300 = vsyncpa [#allocation4], 1 }
 0x27a   :  { %301 = vsyncpa [#allocation5], 1 }

// kernel: tpu_custom_call.1
= control target key start
LH: loop header
LB: loop body
LE: loop exit
PB: predicated region body
PF: predicated region fallthrough
CT: control target
= control target key end

     0   :  { %13 = vsyncpa [#allocation4], 0  ;;  %s510_s0 = inlined_call_operand.hbm [shape: f32[8,32], index: 0, kind: input, shape index: {}]   ;;  %s511_s1 = inlined_call_operand.vmem [shape: f32[32,32], index: 1, kind: input, shape index: {}]   ;;  %s512_s2 = inlined_call_operand.vmem [shape: f32[32,1], index: 2, kind: input, shape index: {}]   ;;  %s513_s3 = inlined_call_operand.vmem [shape: f32[32,32], index: 3, kind: input, shape index: {}]   ;;  %s514_s4 = inlined_call_operand.vmem [shape: f32[32,1], index: 4, kind: input, shape index: {}]   ;;  %s515_s5 = inlined_call_operand.vmem [shape: f32[1,32], index: 5, kind: input, shape index: {}]   ;;  %s516_s6 = inlined_call_operand.<no memory space> [shape: f32[1], index: 6, kind: input, shape index: {}]   ;;  %s517_s7 = inlined_call_operand.hbm [shape: f32[1,8], index: 7, kind: output, shape index: {}]  }
   0x1   :  { %14 = vsyncpa [#allocation5], 0  ;;  %s20_s26 = sshll.u32 %s510_s0, 4  ;;  %s396_s27 = smov [#allocation3]   ;;  %s21_s26 = int_to_ptr.hbm [resolvable:$true] %s20_s26 }
   0x2   :  { %s22_s28 = sshll.u32 %s396_s27, 4  ;;  %s23_s28 = int_to_ptr.vmem [resolvable:$true] %s22_s28 }
   0x3   :  { %25 = dma.hbm_to_vmem [thread:$0]  %s21_s26, 128, %s23_s28, [#allocation4]  }
   0x4   :  { %392 = dma.done.wait [#allocation4], 128  }
   0x5   :  { %393 = vsyncadd [#allocation4], 4294967168  ;;  %v397_v0 = vmov 0   ;;  %v42_v1 = vld [vmem:[%s511_s1] sm:$0xff]  ;;  %v50_v2 = vld [vmem:[%s512_s2 + $0x18] sm:$0xff]  ;;  %vm103_vm0 = vcmask 261120   ;;  %v259_v59 = vstv %s516_s6 }
   0x6   :  { %325 = vset.pattern.permute.xlu1 %v397_v0  ;;  %326 = vset.pattern.permute.xlu2 %v397_v0  ;;  %v43_v3 = vld [vmem:[%s511_s1 + $0x8] sm:$0xff]  ;;  %v49_v4 = vld [vmem:[%s512_s2 + $0x10] sm:$0xff]  ;;  %v45_v6 = vld [vmem:[%s511_s1 + $0x18] sm:$0xff]  ;;  %s398_s13 = smov [#allocation6]   ;;  %s292_s17 = sshll.u32 %s517_s7, 4  ;;  %vm283_vm1 = vcmask 57344   ;;  %s293_s17 = int_to_ptr.hbm [resolvable:$true] %s292_s17 }
   0x7   :  { %71 = vxpose.xlu0.b32.start [1/4] (short) (narrow) %v42_v1, 32  ;;  %68 = vperm.xlu1 %325, %v50_v2   ;;  %v44_v5 = vld [vmem:[%s511_s1 + $0x10] sm:$0xff]  ;;  %v46_v7 = vld [vmem:[#allocation3] sm:$0xff]  ;;  %v153_v9 = vld [vmem:[%s513_s3 + $0x8] sm:$0xff]  ;;  %s290_s14 = sshll.u32 %s398_s13, 4  ;;  %s291_s14 = int_to_ptr.vmem [resolvable:$true] %s290_s14 }
   0x8   :  { %302 = vmatpush.xpose.msk.msra.mxu0 %vm103_vm0, %v46_v7  ;;  %312 = vmatpush.xpose.msk.msra.mxu1 %vm103_vm0, %v46_v7  ;;  %v152_v8 = vld [vmem:[%s513_s3] sm:$0xff]  ;;  %v154_v10 = vld [vmem:[%s513_s3 + $0x10] sm:$0xff]  ;;  %v155_v11 = vld [vmem:[%s513_s3 + $0x18] sm:$0xff] }
   0x9   :  { %v48_v12 = vld [vmem:[%s512_s2 + $0x8] sm:$0xff]  ;;  %v47_v13 = vld [vmem:[%s512_s2] sm:$0xff]  ;;  %v159_v15 = vld [vmem:[%s514_s4 + $0x18] sm:$0xff] }
   0xa   :  { %58 = vperm.xlu2 %326, %v48_v12   ;;  %v158_v17 = vld [vmem:[%s514_s4 + $0x10] sm:$0xff]  ;;  %v156_v19 = vld [vmem:[%s514_s4] sm:$0xff]  ;;  %v157_v27 = vld [vmem:[%s514_s4 + $0x8] sm:$0xff] }
   0xb   :  { %v257_v57 = vld [vmem:[%s515_s5] sm:$0x1] }
   0xf   :  { %72 = vxpose.xlu0.b32.cont [2/4] (short) (narrow) %v43_v3, 32  ;;  %63 = vperm.xlu1 %325, %v49_v4  }
  0x12   :  { %53 = vperm.xlu2 %326, %v47_v13  }
  0x17   :  { %73 = vxpose.xlu0.b32.cont [3/4] (short) (narrow) %v44_v5, 32 }
  0x1a   :  { %177 = vperm.xlu2 %326, %v159_v15  }
  0x1f   :  { %74 = vxpose.xlu0.b32.end [4/4] (short) (narrow) %v45_v6, 32 }
  0x22   :  { %172 = vperm.xlu2 %326, %v158_v17  }
  0x2a   :  { %162 = vperm.xlu2 %326, %v156_v19  }
  0x44   :  { %180 = vxpose.xlu1.b32.start [1/4] (short) (narrow) %v152_v8, 32 }
  0x4c   :  { %181 = vxpose.xlu1.b32.cont [2/4] (short) (narrow) %v153_v9, 32 }
  0x54   :  { %182 = vxpose.xlu1.b32.cont [3/4] (short) (narrow) %v154_v10, 32 }
  0x5c   :  { %183 = vxpose.xlu1.b32.end [4/4] (short) (narrow) %v155_v11, 32 }
  0x64   :  { %v59_v26 = vpop.permute.xlu2 %58 }
  0x6c   :  { %v54_v34 = vpop.permute.xlu2 %53 }
  0x74   :  { %v178_v42 = vpop.permute.xlu2 %177 }
  0x79   :  { %v69_v21 = vpop.permute.xlu1 %68 }
  0x7c   :  { %v173_v44 = vpop.permute.xlu2 %172 }
  0x81   :  { %v64_v23 = vpop.permute.xlu1 %63 }
  0x84   :  { %v163_v52 = vpop.permute.xlu2 %162 }
  0x86   :  { %327 = vset.pattern.permute.xlu0 %v397_v0 }
  0x8d   :  { %167 = vperm.xlu0 %327, %v157_v27  }
  0xab   :  { %v87_v14 = vpop.trf.xlu0 }
  0xac   :  { %303 = vmatmul.msk.f32.vlgmr.msra.gmra.mxu0 %vm103_vm0, %v87_v14 }
  0xb3   :  { %v88_v16 = vpop.trf.xlu0 }
  0xb4   :  { %304 = vmatmul.msk.f32.gmra.mxu0 %vm103_vm0, %v88_v16 }
  0xbb   :  { %v89_v18 = vpop.trf.xlu0 }
  0xbc   :  { %305 = vmatmul.msk.f32.gmra.mxu0 %vm103_vm0, %v89_v18 }
  0xc3   :  { %v90_v20 = vpop.trf.xlu0 }
  0xc4   :  { %306 = vmatmul.msk.f32.vlgmr.msra.gmra.mxu1 %vm103_vm0, %v90_v20 }
  0xe8   :  { %v196_v25 = vpop.trf.xlu1 }
  0xf0   :  { %v197_v33 = vpop.trf.xlu1 }
  0xf8   :  { %v198_v39 = vpop.trf.xlu1 }
  0xff   :  { %v168_v45 = vpop.permute.xlu0 %167 }
 0x100   :  { %v199_v41 = vpop.trf.xlu1 }
 0x129   :  { %v136_v22 = vpop.f32.mrf.mxu0 }
 0x12a   :  { %v137_v35 = vadd.f32 %v136_v22, %v54_v34 }
 0x131   :  { %v139_v24 = vpop.f32.mrf.mxu0 }
 0x132   :  { %v140_v32 = vadd.f32 %v139_v24, %v59_v26 }
 0x139   :  { %v142_v28 = vpop.f32.mrf.mxu0 }
 0x13a   :  { %v143_v30 = vadd.f32 %v142_v28, %v64_v23 }
 0x141   :  { %v145_v29 = vpop.f32.mrf.mxu1 }
 0x142   :  { %v146_v31 = vadd.f32 %v145_v29, %v69_v21 }
 0x144   :  { %328 = vtanh.f32 %v146_v31 }
 0x145   :  { %330 = vtanh.f32 %v143_v30 }
 0x146   :  { %332 = vtanh.f32 %v140_v32 }
 0x147   :  { %334 = vtanh.f32 %v137_v35 }
 0x14a   :  { %v329_v36 = vpop.eup %328 }
 0x14b   :  { %236 = vmatpush.msrb.mxu1 %v329_v36  ;;  %313 = vmatpush.msra.mxu2 %v329_v36  ;;  %v331_v37 = vpop.eup %330 }
 0x14c   :  { %314 = vmatpush.msra.mxu3 %v329_v36  ;;  %v333_v38 = vpop.eup %332 }
 0x14d   :  { %237 = vmatpush.msrb.mxu1 %v331_v37  ;;  %315 = vmatpush.msra.mxu2 %v331_v37  ;;  %v335_v40 = vpop.eup %334 }
 0x14e   :  { %316 = vmatpush.msra.mxu3 %v331_v37 }
 0x14f   :  { %238 = vmatpush.msrb.mxu1 %v333_v38  ;;  %317 = vmatpush.msra.mxu2 %v333_v38 }
 0x150   :  { %318 = vmatpush.msra.mxu3 %v333_v38 }
 0x151   :  { %239 = vmatpush.msrb.mxu1 %v335_v40  ;;  %319 = vmatpush.msra.mxu2 %v335_v40 }
 0x152   :  { %320 = vmatpush.msra.mxu3 %v335_v40  ;;  %307 = vmatmul.msk.f32.vlgmr.msrb.gmra.mxu1 %vm103_vm0, %v196_v25 }
 0x153   :  { %308 = vmatmul.msk.f32.vlgmr.msra.gmra.mxu2 %vm103_vm0, %v197_v33  ;;  %309 = vmatmul.msk.f32.vlgmr.msra.gmra.mxu3 %vm103_vm0, %v198_v39 }
 0x15b   :  { %310 = vmatmul.msk.f32.gmra.mxu3 %vm103_vm0, %v199_v41 }
 0x1cf   :  { %v241_v50 = vpop.f32.mrf.mxu1 }
 0x1d0   :  { %v242_v53 = vadd.f32 %v241_v50, %v163_v52 }
 0x1d6   :  { %v247_v43 = vpop.f32.mrf.mxu3  ;;  %v244_v46 = vpop.f32.mrf.mxu2 }
 0x1d7   :  { %v248_v48 = vadd.f32 %v247_v43, %v173_v44  ;;  %v245_v51 = vadd.f32 %v244_v46, %v168_v45 }
 0x1de   :  { %v250_v47 = vpop.f32.mrf.mxu3 }
 0x1df   :  { %v251_v49 = vadd.f32 %v250_v47, %v178_v42 }
 0x1e1   :  { %336 = vtanh.f32 %v251_v49 }
 0x1e2   :  { %338 = vtanh.f32 %v248_v48 }
 0x1e3   :  { %340 = vtanh.f32 %v245_v51 }
 0x1e4   :  { %342 = vtanh.f32 %v242_v53 }
 0x1e7   :  { %v337_v54 = vpop.eup %336 }
 0x1e8   :  { %275 = vmatpush.msrb.mxu2 %v337_v54  ;;  %v339_v55 = vpop.eup %338 }
 0x1e9   :  { %v341_v56 = vpop.eup %340 }
 0x1ea   :  { %276 = vmatpush.msrb.mxu2 %v339_v55  ;;  %v343_v58 = vpop.eup %342 }
 0x1ec   :  { %277 = vmatpush.msrb.mxu2 %v341_v56 }
 0x1ee   :  { %278 = vmatpush.msrb.mxu2 %v343_v58 }
 0x1ef   :  { %311 = vmatmul.msk.f32.vlgmr.msrb.gmra.mxu2 %vm103_vm0, %v257_v57 }
 0x272   :  { %v280_v60 = vpop.f32.mrf.mxu2 }
 0x273   :  { %v281_v61 = vadd.f32 %v280_v60, %v259_v59 }
 0x275   :  { %284 = vst.msk [vmem:[#allocation6] sm:$0x1] %vm283_vm1, %v281_v61 }
 0x276   :  { %295 = dma.vmem_to_hbm [thread:$0]  %s291_s14, 16, %s293_s17, [#allocation5]  }
 0x277   :  { %394 = dma.done.wait [#allocation5], 16  }
 0x278   :  { %395 = vsyncadd [#allocation5], 4294967280 }
 0x279   :  { %300 = vsyncpa [#allocation4], 1 }
 0x27a   :  { %301 = vsyncpa [#allocation5], 1 }

</bundles_post_ra>
